<compile_context>
chip_gen: v5e
topology: v5e:2x2
jax: 0.10.0
libtpu: 0.0.40
codegen_flags: <defaults>
</compile_context>

<pallas_src>
import functools

import jax
import jax.numpy as jnp
import numpy as np
from jax.experimental import pallas as pl
from jax.experimental.pallas import tpu as pltpu

R_PAD = 128          # num_rel_cls (101) padded up to one full lane width
NEG_BIG = -1e30      # bias padding -> exp(att - m) underflows to exactly 0


# ---------------------------------------------------------------------------
# Kernel body (shared by the single-bag and batched entry points)
# ---------------------------------------------------------------------------
def _bag_one_kernel(feat_ref, wfcT_ref, bfc_ref, logits_ref, *, bags, bag_size):
    """One grid step: `bags` bags of `bag_size` instances, whole step in VMEM.

    feat_ref   : (bags*bag_size, H)  f32 features, lane-dense on H
    wfcT_ref   : (H, R_PAD)          f32 classifier weight, pre-transposed + zero-padded
    bfc_ref    : (1, R_PAD)          f32 classifier bias, padded with NEG_BIG
    logits_ref : (bags, R_PAD)       f32 per-bag logits, lane-dense
    """
    f = feat_ref[...]                                                   # (bags*N, H)

    # fc(features): one MXU matmul covering every instance of every bag in
    # this block; output lane-dense (bags*N, 128).
    att = jnp.dot(f, wfcT_ref[...],
                  preferred_element_type=jnp.float32) + bfc_ref[...]    # (bags*N, 128)

    # softmax over the relation-class axis (lanes), per instance.
    m = jnp.max(att, axis=-1, keepdims=True)                            # XLU lane reduce
    e = jnp.exp(att - m)                                                # EUP; padded lanes -> 0
    inv = pl.reciprocal(jnp.sum(e, axis=-1, keepdims=True), approx=False)  # EUP recip
    scores = e * inv                                                    # (bags*N, 128)

    # max over instances within each bag: regroup sublanes into (bags, N, 128)
    # (layout-preserving: splits full 8-sublane vreg groups) and reduce axis 1.
    scores = scores.reshape(bags, bag_size, R_PAD)
    logits_ref[...] = jnp.max(scores, axis=1)                           # (bags, 128)


# ---------------------------------------------------------------------------
# One-time parameter layout (hoisted out of the per-call path)
# ---------------------------------------------------------------------------
def prepare_classifier(params):
    """Build the lane-dense, R_PAD-padded classifier once at load time."""
    w = params["w_fc"].astype(jnp.float32)                              # (R, H) torch layout
    b = params["b_fc"].astype(jnp.float32)                              # (R,)
    R, H = w.shape
    wfcT = jnp.zeros((H, R_PAD), jnp.float32).at[:, :R].set(w.T)        # (H, 128)
    bfc = jnp.full((1, R_PAD), NEG_BIG, jnp.float32).at[0, :R].set(b)   # (1, 128)
    return {"wfcT": wfcT, "bfc": bfc, "num_rel_cls": R}


# ---------------------------------------------------------------------------
# Single-bag forward (matches the PyTorch module's eval forward signature)
# ---------------------------------------------------------------------------
def bag_one(features, prep, picked_label, bag_attention_target):
    """Eval-mode forward of BagOne for one bag.

    `picked_label` and `bag_attention_target` are unused in the eval path,
    exactly as in the PyTorch module.
    """
    del picked_label, bag_attention_target
    N, _ = features.shape
    R = prep["num_rel_cls"]

    vmem = pl.BlockSpec(memory_space=pltpu.MemorySpace.VMEM)
    kernel = functools.partial(_bag_one_kernel, bags=1, bag_size=N)
    logits = pl.pallas_call(
        kernel,
        out_shape=jax.ShapeDtypeStruct((1, R_PAD), jnp.float32),
        in_specs=[vmem, vmem, vmem],
        out_specs=vmem,
    )(features.astype(jnp.float32), prep["wfcT"], prep["bfc"])

    bag_logits = logits[0, :R]                                          # (R,)
    assert bag_logits.shape == (R,)                                     # mirrors module assert
    attention_loss = jnp.float32(0.0)                                   # module returns 0
    return bag_logits, attention_loss


# ---------------------------------------------------------------------------
# Batched forward: many bags per pallas_call (throughput path)
# ---------------------------------------------------------------------------
def bag_one_batched(features, prep, *, bags_per_block=16):
    """Eval-mode BagOne over a batch of bags.

    features : (B, N, H) -- B independent bags of N instances each.
    Returns  : ((B, R) bag logits, attention_loss=0).

    bags_per_block=16 with N=8 gives a 128-row MXU tile (use 32 on v6e/v7x to
    fill the 256-wide MXU M-dim); VMEM is never the constraint here.
    """
    B, N, H = features.shape
    R = prep["num_rel_cls"]
    Bb = bags_per_block

    feat = features.astype(jnp.float32)
    B_pad = ((B + Bb - 1) // Bb) * Bb
    if B_pad != B:
        feat = jnp.concatenate(
            [feat, jnp.zeros((B_pad - B, N, H), jnp.float32)], axis=0)
    feat_flat = feat.reshape(B_pad * N, H)                              # (B_pad*N, H)

    kernel = functools.partial(_bag_one_kernel, bags=Bb, bag_size=N)
    logits = pl.pallas_call(
        kernel,
        out_shape=jax.ShapeDtypeStruct((B_pad, R_PAD), jnp.float32),
        grid=(B_pad // Bb,),
        in_specs=[
            pl.BlockSpec((Bb * N, H), lambda i: (i, 0)),                # bag block
            pl.BlockSpec((H, R_PAD), lambda i: (0, 0)),                 # weight: VMEM-resident
            pl.BlockSpec((1, R_PAD), lambda i: (0, 0)),                 # bias:   VMEM-resident
        ],
        out_specs=pl.BlockSpec((Bb, R_PAD), lambda i: (i, 0)),          # sublane-full store
        compiler_params=pltpu.CompilerParams(
            dimension_semantics=("parallel",)),                         # megacore on v7x
    )(feat_flat, prep["wfcT"], prep["bfc"])

    bag_logits = logits[:B, :R]                                         # (B, R)
    attention_loss = jnp.float32(0.0)
    return bag_logits, attention_loss


# ---------------------------------------------------------------------------
# Plain-JAX reference + param init
# ---------------------------------------------------------------------------
def reference(features, params):
    """Plain-JAX reference matching the PyTorch eval-mode forward (one bag)."""
    att = features @ params["w_fc"].T + params["b_fc"]                  # (N, R)
    scores = jax.nn.softmax(att, axis=-1)                               # (N, R)
    return jnp.max(scores, axis=0), jnp.float32(0.0)                    # (R,), 0


def init_params(key, pooling_dim, num_rel_cls):
    H, R = pooling_dim, num_rel_cls
    k0, k1 = jax.random.split(key, 2)
    s = 0.05
    return {
        # classifier: nn.Linear(H, R)  (PyTorch weight layout (R, H))
        "w_fc": s * jax.random.normal(k0, (R, H), jnp.float32),
        "b_fc": s * jax.random.normal(k1, (R,), jnp.float32),
    }


if __name__ == "__main__":
    key = jax.random.PRNGKey(0)
    k_param, k_feat, k_bfeat, k_tgt = jax.random.split(key, 4)

    N, H, R = 8, 32, 101   # bag size, pooling_dim, num_rel_cls (fixed by module)
    B = 24                 # batched-path bag count (not a multiple of Bb -> exercises padding)

    params = init_params(k_param, H, R)
    prep = prepare_classifier(params)      # one-time layout; hoisted out of the call path

    # ---- single-bag path (module-equivalent forward) ----
    features = jax.random.normal(k_feat, (N, H), jnp.float32)
    bag_attention_target = jax.random.bernoulli(k_tgt, 0.5, (N,)).astype(jnp.float32)
    picked_label = jnp.int32(3)  # unused in eval path

    bag_logits, attention_loss = bag_one(
        features, prep, picked_label, bag_attention_target)
    jax.block_until_ready((bag_logits, attention_loss))

    ref_logits, ref_loss = reference(features, params)
    np.testing.assert_allclose(np.asarray(bag_logits), np.asarray(ref_logits),
                               rtol=1e-4, atol=5e-5)
    np.testing.assert_allclose(np.asarray(attention_loss), np.asarray(ref_loss),
                               rtol=0, atol=0)

    # ---- batched path (many bags per pallas_call, parallel grid) ----
    feats_b = jax.random.normal(k_bfeat, (B, N, H), jnp.float32)
    blogits, bloss = bag_one_batched(feats_b, prep, bags_per_block=16)
    jax.block_until_ready((blogits, bloss))

    ref_b = jax.vmap(lambda f: reference(f, params)[0])(feats_b)        # (B, R)
    np.testing.assert_allclose(np.asarray(blogits), np.asarray(ref_b),
                               rtol=1e-4, atol=5e-5)
    np.testing.assert_allclose(np.asarray(bloss), 0.0, rtol=0, atol=0)

    print("KERNEL_OK")
</pallas_src>

<mosaic_0001>
module attributes {stable_mosaic.version = 11 : i64} {
  func.func @_bag_one_kernel(%arg0: memref<8x32xf32, #tpu.memory_space<vmem>>, %arg1: memref<32x128xf32, #tpu.memory_space<vmem>>, %arg2: memref<1x128xf32, #tpu.memory_space<vmem>>, %arg3: memref<1x128xf32, #tpu.memory_space<vmem>>) attributes {dimension_semantics = [], scalar_prefetch = 0 : i64, scratch_operands = 0 : i64, tpu.core_type = #tpu.core_type<tc>} {
    %c0 = arith.constant 0 : index
    %c0_0 = arith.constant 0 : index
    %0 = vector.load %arg0[%c0, %c0_0] : memref<8x32xf32, #tpu.memory_space<vmem>>, vector<8x32xf32>
    %c0_1 = arith.constant 0 : index
    %c0_2 = arith.constant 0 : index
    %1 = vector.load %arg1[%c0_1, %c0_2] : memref<32x128xf32, #tpu.memory_space<vmem>>, vector<32x128xf32>
    %cst = arith.constant dense<0.000000e+00> : vector<8x128xf32>
    %2 = tpu.matmul %0, %1, %cst {dimension_numbers = #tpu.dot_dimension_numbers<[1], [0], [0], [1], [0, 0, 1, 1], [], []>} : vector<8x32xf32>, vector<32x128xf32>, vector<8x128xf32> -> vector<8x128xf32>
    %c0_3 = arith.constant 0 : index
    %c0_4 = arith.constant 0 : index
    %3 = vector.load %arg2[%c0_3, %c0_4] : memref<1x128xf32, #tpu.memory_space<vmem>>, vector<1x128xf32>
    %4 = vector.broadcast %3 : vector<1x128xf32> to vector<8x128xf32>
    %5 = arith.addf %2, %4 : vector<8x128xf32>
    %cst_5 = arith.constant dense<0xFF800000> : vector<8xf32>
    %6 = vector.multi_reduction <maximumf>, %5, %cst_5 [1] : vector<8x128xf32> to vector<8xf32>
    %7 = vector.shape_cast %6 : vector<8xf32> to vector<8x1xf32>
    %8 = vector.broadcast %7 : vector<8x1xf32> to vector<8x128xf32>
    %9 = arith.subf %5, %8 : vector<8x128xf32>
    %10 = math.exp %9 : vector<8x128xf32>
    %cst_6 = arith.constant dense<0.000000e+00> : vector<8xf32>
    %11 = vector.multi_reduction <add>, %10, %cst_6 [1] : vector<8x128xf32> to vector<8xf32>
    %12 = vector.shape_cast %11 : vector<8xf32> to vector<8x1xf32>
    %13 = tpu.reciprocal %12 : vector<8x1xf32> -> vector<8x1xf32>
    %14 = vector.broadcast %13 : vector<8x1xf32> to vector<8x128xf32>
    %15 = arith.mulf %10, %14 : vector<8x128xf32>
    %16 = vector.shape_cast %15 : vector<8x128xf32> to vector<1x8x128xf32>
    %cst_7 = arith.constant dense<0xFF800000> : vector<1x128xf32>
    %17 = vector.multi_reduction <maximumf>, %16, %cst_7 [1] : vector<1x8x128xf32> to vector<1x128xf32>
    %c0_8 = arith.constant 0 : index
    %c0_9 = arith.constant 0 : index
    %18 = vector.load %arg3[%c0_8, %c0_9] : memref<1x128xf32, #tpu.memory_space<vmem>>, vector<1x128xf32>
    tpu.vector_store %arg3[%c0_8, %c0_9], %17 {strides = array<i32>} : memref<1x128xf32, #tpu.memory_space<vmem>>, vector<1x128xf32>,
    return
  }
}

</mosaic_0001>

<bundles_post_ra>
// kernel: tpu_custom_call.1
= control target key start
LH: loop header
LB: loop body
LE: loop exit
PB: predicated region body
PF: predicated region fallthrough
CT: control target
= control target key end

     0   :  { %8 = vsyncpa [#allocation3], 0  ;;  %s251_s0 = inlined_call_operand.hbm [shape: f32[8,32], index: 0, kind: input, shape index: {}]   ;;  %s252_s1 = inlined_call_operand.hbm [shape: f32[32,128], index: 1, kind: input, shape index: {}]   ;;  %s253_s2 = inlined_call_operand.vmem [shape: f32[1,128], index: 2, kind: input, shape index: {}]   ;;  %s254_s3 = inlined_call_operand.hbm [shape: f32[1,128], index: 3, kind: output, shape index: {}]  }
   0x1   :  { %9 = vsyncpa [#allocation6], 0 }
   0x2   :  { %10 = vsyncpa [#allocation4], 0  ;;  %s16_s14 = sshll.u32 %s251_s0, 4  ;;  %s214_s15 = smov [#allocation2]   ;;  %s17_s14 = int_to_ptr.hbm [resolvable:$true] %s16_s14 }
   0x3   :  { %s18_s16 = sshll.u32 %s214_s15, 4  ;;  %s26_s19 = sshll.u32 %s252_s1, 4  ;;  %s19_s16 = int_to_ptr.vmem [resolvable:$true] %s18_s16  ;;  %s27_s19 = int_to_ptr.hbm [resolvable:$true] %s26_s19 }
   0x4   :  { %21 = dma.hbm_to_vmem [thread:$0]  %s17_s14, 128, %s19_s16, [#allocation3]  }
   0x5   :  { %s215_s20 = smov [#allocation5]   ;;  %s216_s22 = smov 128  }
   0x6   :  { %s28_s21 = sshll.u32 %s215_s20, 4  ;;  %s217_s23 = smov 8   ;;  %s29_s21 = int_to_ptr.vmem [resolvable:$true] %s28_s21 }
   0x7   :  { %34 = dma.hbm_to_vmem [thread:$0]  %s27_s19, 512, %s29_s21, [#allocation6], %s216_s22, %s216_s22, %s217_s23  }
   0x8   :  { %208 = dma.done.wait [#allocation3], 128  }
   0x9   :  { %209 = vsyncadd [#allocation3], 4294967168 }
   0xa   :  { %210 = dma.done.wait [#allocation6], 512  }
   0xb   :  { %211 = vsyncadd [#allocation6], 4294966784  ;;  %v49_v0 = vld [vmem:[#allocation5 + $0x18] sm:$0xff]  ;;  %v48_v1 = vld [vmem:[#allocation5 + $0x10] sm:$0xff]  ;;  %vm54_vm0 = vcmask 261120   ;;  %s114_s27 = sshll.u32 %s254_s3, 4  ;;  %s115_s27 = int_to_ptr.hbm [resolvable:$true] %s114_s27 }
   0xc   :  { %70 = vmatpush.msra.mxu0 %v49_v0  ;;  %v47_v2 = vld [vmem:[#allocation5 + $0x8] sm:$0xff]  ;;  %v46_v3 = vld [vmem:[#allocation5] sm:$0xff]  ;;  %v45_v4 = vld [vmem:[#allocation2] sm:$0xff] }
   0xd   :  { %v131_v5 = vld [vmem:[%s253_s2] ss:$0 sm:$0xff]  ;;  %s218_s2 = smov [#allocation7]  }
   0xe   :  { %71 = vmatpush.msra.mxu0 %v48_v1  ;;  %s112_s24 = sshll.u32 %s218_s2, 4  ;;  %s113_s24 = int_to_ptr.vmem [resolvable:$true] %s112_s24 }
  0x10   :  { %72 = vmatpush.msra.mxu0 %v47_v2 }
  0x12   :  { %73 = vmatpush.msra.mxu0 %v46_v3 }
  0x13   :  { %125 = vmatmul.msk.f32.vlgmr.msra.gmra.mxu0 %vm54_vm0, %v45_v4 }
  0x90   :  { %v75_v6 = vpop.f32.mrf.mxu0 }
  0x91   :  { %v76_v7 = vadd.f32 %v131_v5, %v75_v6 }
  0x93   :  { %78 = vmax.xlane.f32.xlu0 %v76_v7 }
 0x106   :  { %v79_v8 = vpop.xlane.xlu0 %78 }
 0x107   :  { %v80_v9 = vsub.f32 %v76_v7, %v79_v8 }
 0x109   :  { %v81_v10 = vmul.f32 1.442695, %v80_v9 }
 0x10b   :  { %132 = vpow2.f32 %v81_v10 }
 0x111   :  { %v133_v11 = vpop.eup %132 }
 0x112   :  { %83 = vadd.xlane.f32.xlu0 %v133_v11 }
 0x185   :  { %v84_v12 = vpop.xlane.xlu0 %83 }
 0x186   :  { %134 = vrcp.f32 %v84_v12  ;;  %v96_v16 = vand.u32 2147483648, %v84_v12  ;;  %v94_v18 = vand.u32 2147483647, %v84_v12  ;;  %vm90_vm2 = vweird.f32 %v84_v12 }
 0x188   :  { %v97_v20 = vor.u32 1.1754944e-38, %v96_v16  ;;  %vm95_vm4 = vcmp.eq.f32.partialorder %v94_v18, 8.507059e+37 }
 0x18c   :  { %v135_v13 = vpop.eup %134 }
 0x18d   :  { %v86_v14 = vmul.f32 %v135_v13, %v84_v12  ;;  %vm91_vm1 = vweird.f32 %v135_v13 }
 0x18e   :  { %vm92_vm3 = vmor %vm90_vm2, %vm91_vm1 }
 0x18f   :  { %v87_v15 = vsub.f32 1.0, %v86_v14 }
 0x191   :  { %v88_v17 = vmul.f32 %v135_v13, %v87_v15 }
 0x193   :  { %v89_v19 = vadd.f32 %v135_v13, %v88_v17 }
 0x195   :  { %v93_v21 = vsel %vm92_vm3, %v135_v13, %v89_v19 }
 0x196   :  { %v98_v22 = vsel %vm95_vm4, %v97_v20, %v93_v21 }
 0x197   :  { %v99_v23 = vmul.f32 %v133_v11, %v98_v22 }
 0x199   :  { %v100_v24 = vrot.slane %v99_v23, 4 }
 0x19b   :  { %v101_v25 = vmax.f32 %v99_v23, %v100_v24 }
 0x19d   :  { %v102_v26 = vrot.slane %v101_v25, 2 }
 0x19f   :  { %v103_v27 = vmax.f32 %v101_v25, %v102_v26 }
 0x1a1   :  { %v104_v28 = vrot.slane %v103_v27, 1 }
 0x1a3   :  { %v105_v29 = vmax.f32 %v103_v27, %v104_v28 }
 0x1a5   :  { %106 = vst [vmem:[#allocation7] sm:$0x1] %v105_v29 }
 0x1a6   :  { %117 = dma.vmem_to_hbm [thread:$0]  %s113_s24, 16, %s115_s27, [#allocation4]  }
 0x1a7   :  { %212 = dma.done.wait [#allocation4], 16  }
 0x1a8   :  { %213 = vsyncadd [#allocation4], 4294967280 }
 0x1a9   :  { %122 = vsyncpa [#allocation3], 1 }
 0x1aa   :  { %123 = vsyncpa [#allocation6], 1 }
 0x1ab   :  { %124 = vsyncpa [#allocation4], 1 }

</bundles_post_ra>
